<compile_context>
chip_gen: v5e
topology: v5e:2x2
jax: 0.10.0
libtpu: 0.0.40
codegen_flags: <defaults>
</compile_context>

<pallas_src>
import math

import jax
import jax.numpy as jnp
from jax.experimental import pallas as pl


def _round_up(x, m):
    return ((x + m - 1) // m) * m


def _full_spec(shape):
    return pl.BlockSpec(shape, lambda: (0,) * len(shape))


def _pad_rows(a, rows):
    if a.shape[0] == rows:
        return a
    return jnp.pad(a, ((0, rows - a.shape[0]), (0, 0)))


# ---------------------------------------------------------------------------
# Tracker: fused LSTMCell step kernel
# ---------------------------------------------------------------------------
def _build_tracker_step(batch_pad, size, tracker_size, state_lanes):
    S, T, Bp, Lt = size, tracker_size, batch_pad, state_lanes
    in_features = 3 * S + T            # fused [x | h] width (128 for S=T=32)
    gate_width = 4 * T                 # PyTorch LSTMCell gate order (i, f, g, o)

    def kernel(xh_ref, hc_ref, w_ref, b_ref, hc_out_ref):
        # One MXU pass: [Bp, 3S+T] @ [3S+T, 4T] (input + recurrent matmul fused).
        gates = jnp.dot(xh_ref[...], w_ref[...],
                        preferred_element_type=jnp.float32) + b_ref[...]
        # NOTE: with T=32 these are sub-128-lane slices; gate-major weight layout
        # only pays off once tracker_size >= 128.
        i_g = jax.nn.sigmoid(gates[:, 0 * T:1 * T])
        f_g = jax.nn.sigmoid(gates[:, 1 * T:2 * T])
        g_g = jnp.tanh(gates[:, 2 * T:3 * T])
        o_g = jax.nn.sigmoid(gates[:, 3 * T:4 * T])
        c_old = hc_ref[:, T:2 * T]
        c_new = f_g * c_old + i_g * g_g
        h_new = o_g * jnp.tanh(c_new)
        packed = jnp.concatenate([h_new, c_new], axis=1)            # [Bp, 2T]
        if Lt > 2 * T:                                              # lane-dense store
            packed = jnp.concatenate(
                [packed, jnp.zeros((Bp, Lt - 2 * T), packed.dtype)], axis=1)
        hc_out_ref[...] = packed.astype(hc_out_ref.dtype)

    call = pl.pallas_call(
        kernel,
        out_shape=jax.ShapeDtypeStruct((Bp, Lt), jnp.float32),
        in_specs=[_full_spec((Bp, in_features)),
                  _full_spec((Bp, Lt)),
                  _full_spec((in_features, gate_width)),
                  _full_spec((1, gate_width))],
        out_specs=_full_spec((Bp, Lt)),
        input_output_aliases={1: 0},        # recurrent h|c state updated in place
    )

    def step(x_pad, hc, w_cat, bias):
        xh = jnp.concatenate([x_pad, hc[:, :T]], axis=1)            # [Bp, 3S+T]
        return call(xh, hc, w_cat, bias)

    return jax.jit(step, donate_argnums=(1,))


# ---------------------------------------------------------------------------
# Composition: fused tree-LSTM (compute_c_h) kernel
# ---------------------------------------------------------------------------
def _build_compose(n_pad, size, tracker_size, out_lanes):
    S, T, Np, Lc = size, tracker_size, n_pad, out_lanes
    in_features = 2 * S + T
    gate_width = 5 * S                  # compute_c_h gate order (g, i, f1, f2, o)

    def kernel(l_ref, r_ref, t_ref, w_ref, b_ref, out_ref):
        lh, lc = l_ref[:, :S], l_ref[:, S:]
        rh, rc = r_ref[:, :S], r_ref[:, S:]
        x = jnp.concatenate([lh, rh, t_ref[...]], axis=1)           # [Np, 2S+T]
        gates = jnp.dot(x, w_ref[...],
                        preferred_element_type=jnp.float32) + b_ref[...]
        g = jnp.tanh(gates[:, 0 * S:1 * S])
        i = jax.nn.sigmoid(gates[:, 1 * S:2 * S])
        f1 = jax.nn.sigmoid(gates[:, 2 * S:3 * S])
        f2 = jax.nn.sigmoid(gates[:, 3 * S:4 * S])
        o = jax.nn.sigmoid(gates[:, 4 * S:5 * S])
        c = f1 * lc + f2 * rc + i * g
        h = o * jnp.tanh(c)
        packed = jnp.concatenate([h, c], axis=1)                    # [Np, 2S]
        if Lc > 2 * S:
            packed = jnp.concatenate(
                [packed, jnp.zeros((Np, Lc - 2 * S), packed.dtype)], axis=1)
        out_ref[...] = packed.astype(out_ref.dtype)

    call = pl.pallas_call(
        kernel,
        out_shape=jax.ShapeDtypeStruct((Np, Lc), jnp.float32),
        in_specs=[_full_spec((Np, 2 * S)),
                  _full_spec((Np, 2 * S)),
                  _full_spec((Np, T)),
                  _full_spec((in_features, gate_width)),
                  _full_spec((1, gate_width))],
        out_specs=_full_spec((Np, Lc)),
    )

    def reduce_fn(left, right, track_h, w_cat, bias):
        return call(left, right, track_h, w_cat, bias)

    return jax.jit(reduce_fn)


# ---------------------------------------------------------------------------
# Modules
# ---------------------------------------------------------------------------
class TrackerPallas:
    """JAX/Pallas port of net.py::Tracker (nn.LSTMCell(3*size, tracker_size))."""

    def __init__(self, size, tracker_size, key, batch_pad=8):
        self.size = size
        self.state_size = tracker_size
        self.batch_pad = batch_pad
        self.state_lanes = _round_up(2 * tracker_size, 128)

        k = 1.0 / math.sqrt(tracker_size)
        ks = jax.random.split(key, 6)
        # torch.nn.LSTMCell(3*size, tracker_size) parameters, uniform(-k, k).
        self.w_ih = jax.random.uniform(ks[0], (4 * tracker_size, 3 * size),
                                       jnp.float32, -k, k)
        self.w_hh = jax.random.uniform(ks[1], (4 * tracker_size, tracker_size),
                                       jnp.float32, -k, k)
        self.b_ih = jax.random.uniform(ks[2], (4 * tracker_size,), jnp.float32, -k, k)
        self.b_hh = jax.random.uniform(ks[3], (4 * tracker_size,), jnp.float32, -k, k)
        # nn.Linear(tracker_size, 3) exists in __init__ but is unused in forward.
        self.w_tr = jax.random.uniform(ks[4], (3, tracker_size), jnp.float32, -k, k)
        self.b_tr = jax.random.uniform(ks[5], (3,), jnp.float32, -k, k)

        # Hoisted, fused parameters: one [3S+T, 4T] weight and one bias row.
        # (Kept f32 for bit-tight parity with the reference; on v6e/v7x cast
        #  w_cat and xh to bf16 with f32 accumulation to halve weight bytes.)
        self.w_cat = jnp.concatenate([self.w_ih.T, self.w_hh.T], axis=0)
        self.bias = (self.b_ih + self.b_hh)[None, :]

        self._step = _build_tracker_step(batch_pad, size, tracker_size,
                                         self.state_lanes)
        self.state = None

    def reset_state(self):
        self.state = None

    def forward(self, bufs, stacks):
        S = self.size
        # bundle(buf[-1])[0], bundle(stack[-1])[0], bundle(stack[-2])[0] -> h parts
        buf_h = jnp.stack([buf[-1][:S] for buf in bufs])
        s1_h = jnp.stack([st[-1][:S] for st in stacks])
        s2_h = jnp.stack([st[-2][:S] for st in stacks])
        x = jnp.concatenate([buf_h, s1_h, s2_h], axis=1)            # [B, 3S]
        batch = x.shape[0]
        x_pad = _pad_rows(x, self.batch_pad)

        if self.state is None:
            self.state = jnp.zeros((self.batch_pad, self.state_lanes), jnp.float32)
        self.state = self._step(x_pad, self.state, self.w_cat, self.bias)

        # Packed [B, 2*tracker_size] (h | c); consumers slice lazily.
        return self.state[:batch, :2 * self.state_size], None


class CompositionPallas:
    """JAX/Pallas port of net.py::Composition (tree-LSTM reduce)."""

    def __init__(self, size, tracker_size, key, n_pad=8):
        self.size = size
        self.tracker_size = tracker_size
        self.n_pad = n_pad
        self.out_lanes = _round_up(2 * size, 128)

        kS = 1.0 / math.sqrt(size)
        kT = 1.0 / math.sqrt(tracker_size)
        ks = jax.random.split(key, 4)
        self.w_left = jax.random.uniform(ks[0], (5 * size, size), jnp.float32, -kS, kS)
        self.b_left = jax.random.uniform(ks[1], (5 * size,), jnp.float32, -kS, kS)
        self.w_right = jax.random.uniform(ks[2], (5 * size, size), jnp.float32, -kS, kS)
        self.w_track = jax.random.uniform(ks[3], (5 * size, tracker_size),
                                          jnp.float32, -kT, kT)

        # Fused [2S+T, 5S] weight and bias row, hoisted once.
        self.w_cat = jnp.concatenate(
            [self.w_left.T, self.w_right.T, self.w_track.T], axis=0)
        self.bias = self.b_left[None, :]

        self._reduce = _build_compose(n_pad, size, tracker_size, self.out_lanes)

    def forward(self, left_in, right_in, tracking):
        # left_in / right_in: lists of packed (2S,) stack entries; tracking: [N, 2T]
        S, T = self.size, self.tracker_size
        n = len(left_in)
        left = _pad_rows(jnp.stack(left_in), self.n_pad)
        right = _pad_rows(jnp.stack(right_in), self.n_pad)
        track_h = _pad_rows(tracking[:, :T], self.n_pad)
        out = self._reduce(left, right, track_h, self.w_cat, self.bias)
        return out[:n, :2 * S]                      # packed (h | c) rows


class SPINNPallas:
    """JAX/Pallas port of net.py::SPINN."""

    def __init__(self, d_hidden, d_tracker, key, batch_pad=8):
        k_tr, k_rd = jax.random.split(key)
        self.size = d_hidden
        self.tracker = TrackerPallas(d_hidden, d_tracker, k_tr, batch_pad)
        self.reduce = CompositionPallas(d_hidden, d_tracker, k_rd, batch_pad)

    def forward(self, buffers, transitions):
        # buffers: [seq, batch, 2*d_hidden]; transitions: [num_trans][batch] ints
        # TODO(synk): shift/reduce scheduling is data-dependent host-side list
        # manipulation (as in the PyTorch reference) and is not fused on-device.
        seq, batch, _ = buffers.shape
        S = self.size
        bufs = [[buffers[t, b] for t in range(seq)] for b in range(batch)]
        stacks = [[buf[0], buf[0]] for buf in bufs]
        self.tracker.reset_state()

        for step in range(len(transitions)):
            tracker_states, _ = self.tracker.forward(bufs, stacks)  # [batch, 2T]
            trans = transitions[step]
            lefts, rights, tracking_idx = [], [], []
            for b in range(batch):
                t_b = int(trans[b])
                if t_b == 3:                        # shift
                    stacks[b].append(bufs[b].pop())
                elif t_b == 2:                      # reduce
                    rights.append(stacks[b].pop())
                    lefts.append(stacks[b].pop())
                    tracking_idx.append(b)
            if rights:
                reduced = self.reduce.forward(
                    lefts, rights, tracker_states[jnp.asarray(tracking_idx)])
                r = 0
                for b in range(batch):
                    if int(trans[b]) == 2:
                        stacks[b].append(reduced[r])
                        r += 1

        # bundle([stack.pop() for stack in stacks])[0] -> h parts, [batch, d_hidden]
        return jnp.stack([stack.pop()[:S] for stack in stacks], axis=0)


# ---------------------------------------------------------------------------
# Pure-JAX reference (no Pallas) mirroring the PyTorch module
# ---------------------------------------------------------------------------
def _lstm_cell_ref(x, h, c, w_ih, w_hh, b_ih, b_hh):
    gates = x @ w_ih.T + b_ih + h @ w_hh.T + b_hh
    H = h.shape[1]
    i, f, g, o = (gates[:, :H], gates[:, H:2 * H],
                  gates[:, 2 * H:3 * H], gates[:, 3 * H:])
    c_new = jax.nn.sigmoid(f) * c + jax.nn.sigmoid(i) * jnp.tanh(g)
    h_new = jax.nn.sigmoid(o) * jnp.tanh(c_new)
    return h_new, c_new


def _compose_ref(lh, lc, rh, rc, th, w_left, b_left, w_right, w_track):
    lstm_in = lh @ w_left.T + b_left + rh @ w_right.T + th @ w_track.T
    g, i, f1, f2, o = jnp.split(lstm_in, 5, axis=1)
    c = (jax.nn.sigmoid(f1) * lc + jax.nn.sigmoid(f2) * rc
         + jax.nn.sigmoid(i) * jnp.tanh(g))
    h = jax.nn.sigmoid(o) * jnp.tanh(c)
    return h, c


def _spinn_reference(model, buffers, transitions):
    S = model.size
    tr, rd = model.tracker, model.reduce
    T = tr.state_size
    seq, batch, _ = buffers.shape
    bufs = [[buffers[t, b] for t in range(seq)] for b in range(batch)]
    stacks = [[buf[0], buf[0]] for buf in bufs]
    h = jnp.zeros((batch, T), jnp.float32)
    c = jnp.zeros((batch, T), jnp.float32)

    for step in range(len(transitions)):
        buf_h = jnp.stack([buf[-1][:S] for buf in bufs])
        s1_h = jnp.stack([st[-1][:S] for st in stacks])
        s2_h = jnp.stack([st[-2][:S] for st in stacks])
        x = jnp.concatenate([buf_h, s1_h, s2_h], axis=1)
        h, c = _lstm_cell_ref(x, h, c, tr.w_ih, tr.w_hh, tr.b_ih, tr.b_hh)
        trans = transitions[step]
        lefts, rights, tracks = [], [], []
        for b in range(batch):
            t_b = int(trans[b])
            if t_b == 3:
                stacks[b].append(bufs[b].pop())
            elif t_b == 2:
                rights.append(stacks[b].pop())
                lefts.append(stacks[b].pop())
                tracks.append(h[b])
        if rights:
            L, R, TH = jnp.stack(lefts), jnp.stack(rights), jnp.stack(tracks)
            hr, cr = _compose_ref(L[:, :S], L[:, S:], R[:, :S], R[:, S:], TH,
                                  rd.w_left, rd.b_left, rd.w_right, rd.w_track)
            packed = jnp.concatenate([hr, cr], axis=1)
            r = 0
            for b in range(batch):
                if int(trans[b]) == 2:
                    stacks[b].append(packed[r])
                    r += 1
    return jnp.stack([st.pop()[:S] for st in stacks], axis=0)


if __name__ == "__main__":
    key = jax.random.PRNGKey(0)
    k_param, k_buf = jax.random.split(key)

    batch, d_hidden, d_tracker, seq = 2, 32, 32, 6
    spinn = SPINNPallas(d_hidden, d_tracker, k_param)

    buffers = jax.random.normal(k_buf, (seq, batch, 2 * d_hidden), jnp.float32)
    # Per-example shift(3)/reduce(2) programs, laid out as [num_transitions, batch].
    ex0 = [3, 3, 2, 3, 2, 3, 2, 2]
    ex1 = [3, 2, 3, 3, 2, 2, 3, 2]
    transitions = [[a, b] for a, b in zip(ex0, ex1)]

    out = spinn.forward(buffers, transitions)
    jax.block_until_ready(out)

    expected = _spinn_reference(spinn, buffers, transitions)
    jax.block_until_ready(expected)

    assert out.shape == (batch, d_hidden), out.shape
    assert jnp.allclose(out, expected, atol=5e-4, rtol=5e-4), (
        "Pallas SPINN output mismatch vs pure-JAX reference: max |diff| = "
        f"{float(jnp.max(jnp.abs(out - expected)))}")

    print("KERNEL_OK")
</pallas_src>

<mosaic_0001>
module attributes {stable_mosaic.version = 11 : i64} {
  func.func @kernel(%arg0: memref<8x128xf32, #tpu.memory_space<vmem>>, %arg1: memref<8x128xf32, #tpu.memory_space<vmem>>, %arg2: memref<128x128xf32, #tpu.memory_space<vmem>>, %arg3: memref<1x128xf32, #tpu.memory_space<vmem>>, %arg4: memref<8x128xf32, #tpu.memory_space<vmem>>) attributes {dimension_semantics = [], scalar_prefetch = 0 : i64, scratch_operands = 0 : i64, tpu.core_type = #tpu.core_type<tc>} {
    %c0 = arith.constant 0 : index
    %c0_0 = arith.constant 0 : index
    %0 = vector.load %arg0[%c0, %c0_0] : memref<8x128xf32, #tpu.memory_space<vmem>>, vector<8x128xf32>
    %c0_1 = arith.constant 0 : index
    %c0_2 = arith.constant 0 : index
    %1 = vector.load %arg2[%c0_1, %c0_2] : memref<128x128xf32, #tpu.memory_space<vmem>>, vector<128x128xf32>
    %cst = arith.constant dense<0.000000e+00> : vector<8x128xf32>
    %2 = tpu.matmul %0, %1, %cst {dimension_numbers = #tpu.dot_dimension_numbers<[1], [0], [0], [1], [0, 0, 1, 1], [], []>} : vector<8x128xf32>, vector<128x128xf32>, vector<8x128xf32> -> vector<8x128xf32>
    %c0_3 = arith.constant 0 : index
    %c0_4 = arith.constant 0 : index
    %3 = vector.load %arg3[%c0_3, %c0_4] : memref<1x128xf32, #tpu.memory_space<vmem>>, vector<1x128xf32>
    %4 = vector.broadcast %3 : vector<1x128xf32> to vector<8x128xf32>
    %5 = arith.addf %2, %4 : vector<8x128xf32>
    %6 = vector.extract_strided_slice %5 {offsets = [0, 0], sizes = [8, 32], strides = [1, 1]} : vector<8x128xf32> to vector<8x32xf32>
    %7 = arith.negf %6 : vector<8x32xf32>
    %8 = math.exp %7 : vector<8x32xf32>
    %cst_5 = arith.constant 1.000000e+00 : f32
    %9 = vector.broadcast %cst_5 : f32 to vector<8x32xf32>
    %10 = arith.addf %9, %8 : vector<8x32xf32>
    %11 = arith.divf %9, %10 : vector<8x32xf32>
    %12 = vector.extract_strided_slice %5 {offsets = [0, 32], sizes = [8, 32], strides = [1, 1]} : vector<8x128xf32> to vector<8x32xf32>
    %13 = arith.negf %12 : vector<8x32xf32>
    %14 = math.exp %13 : vector<8x32xf32>
    %cst_6 = arith.constant 1.000000e+00 : f32
    %15 = vector.broadcast %cst_6 : f32 to vector<8x32xf32>
    %16 = arith.addf %15, %14 : vector<8x32xf32>
    %17 = arith.divf %15, %16 : vector<8x32xf32>
    %18 = vector.extract_strided_slice %5 {offsets = [0, 64], sizes = [8, 32], strides = [1, 1]} : vector<8x128xf32> to vector<8x32xf32>
    %19 = math.tanh %18 : vector<8x32xf32>
    %20 = vector.extract_strided_slice %5 {offsets = [0, 96], sizes = [8, 32], strides = [1, 1]} : vector<8x128xf32> to vector<8x32xf32>
    %21 = arith.negf %20 : vector<8x32xf32>
    %22 = math.exp %21 : vector<8x32xf32>
    %cst_7 = arith.constant 1.000000e+00 : f32
    %23 = vector.broadcast %cst_7 : f32 to vector<8x32xf32>
    %24 = arith.addf %23, %22 : vector<8x32xf32>
    %25 = arith.divf %23, %24 : vector<8x32xf32>
    %c0_8 = arith.constant 0 : index
    %c32 = arith.constant 32 : index
    %26 = vector.load %arg1[%c0_8, %c32] : memref<8x128xf32, #tpu.memory_space<vmem>>, vector<8x32xf32>
    %27 = arith.mulf %17, %26 : vector<8x32xf32>
    %28 = arith.mulf %11, %19 : vector<8x32xf32>
    %29 = arith.addf %27, %28 : vector<8x32xf32>
    %30 = math.tanh %29 : vector<8x32xf32>
    %31 = arith.mulf %25, %30 : vector<8x32xf32>
    %32 = tpu.concatenate %31, %29 in 1 : vector<8x32xf32>, vector<8x32xf32> -> vector<8x64xf32>
    %cst_9 = arith.constant 0.000000e+00 : f32
    %33 = vector.broadcast %cst_9 : f32 to vector<8x64xf32>
    %34 = tpu.concatenate %32, %33 in 1 : vector<8x64xf32>, vector<8x64xf32> -> vector<8x128xf32>
    %c0_10 = arith.constant 0 : index
    %c0_11 = arith.constant 0 : index
    %35 = vector.load %arg4[%c0_10, %c0_11] : memref<8x128xf32, #tpu.memory_space<vmem>>, vector<8x128xf32>
    tpu.vector_store %arg4[%c0_10, %c0_11], %34 {strides = array<i32>} : memref<8x128xf32, #tpu.memory_space<vmem>>, vector<8x128xf32>,
    return
  }
}

</mosaic_0001>

<bundles_post_ra>
// kernel: step.1
= control target key start
LH: loop header
LB: loop body
LE: loop exit
PB: predicated region body
PF: predicated region fallthrough
CT: control target
= control target key end

     0   :  { %9 = vsyncpa [#allocation3], 0  ;;  %s298_s0 = inlined_call_operand.vmem [shape: f32[8,128], index: 0, kind: input, shape index: {}]   ;;  %s299_s1 = inlined_call_operand.hbm [shape: f32[8,128], index: 1, kind: input, shape index: {}, may-alias: {1,4}]   ;;  %s300_s2 = inlined_call_operand.hbm [shape: f32[128,128], index: 2, kind: input, shape index: {}]   ;;  %s301_s3 = inlined_call_operand.vmem [shape: f32[1,128], index: 3, kind: input, shape index: {}]   ;;  %s302_s4 = inlined_call_operand.hbm [shape: f32[8,128], index: 4, kind: output, shape index: {}, may-alias: {1,4}]  }
   0x1   :  { %10 = vsyncpa [#allocation6], 0 }
   0x2   :  { %11 = vsyncpa [#allocation4], 0  ;;  %s19_s17 = sshll.u32 %s299_s1, 4  ;;  %s249_s18 = smov [#allocation2]   ;;  %s20_s17 = int_to_ptr.hbm [resolvable:$true] %s19_s17 }
   0x3   :  { %s21_s19 = sshll.u32 %s249_s18, 4  ;;  %s29_s22 = sshll.u32 %s300_s2, 4  ;;  %s22_s19 = int_to_ptr.vmem [resolvable:$true] %s21_s19  ;;  %s30_s22 = int_to_ptr.hbm [resolvable:$true] %s29_s22 }
   0x4   :  { %24 = dma.hbm_to_vmem [thread:$0]  %s20_s17, 128, %s22_s19, [#allocation3]  }
   0x5   :  { %s250_s23 = smov [#allocation5]   ;;  %s251_s25 = smov 128  }
   0x6   :  { %s31_s24 = sshll.u32 %s250_s23, 4  ;;  %s252_s26 = smov 8   ;;  %s32_s24 = int_to_ptr.vmem [resolvable:$true] %s31_s24 }
   0x7   :  { %37 = dma.hbm_to_vmem [thread:$0]  %s30_s22, 2048, %s32_s24, [#allocation6], %s251_s25, %s251_s25, %s252_s26  }
   0x8   :  { %243 = dma.done.wait [#allocation3], 128  }
   0x9   :  { %244 = vsyncadd [#allocation3], 4294967168 }
   0xa   :  { %245 = dma.done.wait [#allocation6], 2048  }
   0xb   :  { %246 = vsyncadd [#allocation6], 4294965248  ;;  %v64_v0 = vld [vmem:[#allocation5 + $0x78] sm:$0xff]  ;;  %v63_v1 = vld [vmem:[#allocation5 + $0x70] sm:$0xff]  ;;  %s253_s29 = smov 64   ;;  %vm131_vm4 = vcmask 261120  }
   0xc   :  { %69 = vmatpush.msra.mxu0 %v64_v0  ;;  %v62_v2 = vld [vmem:[#allocation5 + $0x68] sm:$0xff]  ;;  %v61_v3 = vld [vmem:[#allocation5 + $0x60] sm:$0xff]  ;;  %v60_v4 = vld [vmem:[#allocation5 + $0x58] sm:$0xff]  ;;  %s143_s7 = sshll.u32 %s302_s4, 4  ;;  %vm133_vm5 = vcmask 523264   ;;  %s144_s7 = int_to_ptr.hbm [resolvable:$true] %s143_s7 }
   0xd   :  { %v59_v5 = vld [vmem:[#allocation5 + $0x50] sm:$0xff]  ;;  %v58_v6 = vld [vmem:[#allocation5 + $0x48] sm:$0xff]  ;;  %v57_v7 = vld [vmem:[#allocation5 + $0x40] sm:$0xff] }
   0xe   :  { %70 = vmatpush.msra.mxu0 %v63_v1  ;;  %v56_v8 = vld [vmem:[#allocation5 + $0x38] sm:$0xff]  ;;  %v55_v9 = vld [vmem:[#allocation5 + $0x30] sm:$0xff]  ;;  %v54_v10 = vld [vmem:[#allocation5 + $0x28] sm:$0xff] }
   0xf   :  { %v53_v11 = vld [vmem:[#allocation5 + $0x20] sm:$0xff]  ;;  %v52_v12 = vld [vmem:[#allocation5 + $0x18] sm:$0xff]  ;;  %v51_v13 = vld [vmem:[#allocation5 + $0x10] sm:$0xff] }
  0x10   :  { %71 = vmatpush.msra.mxu0 %v62_v2  ;;  %v50_v14 = vld [vmem:[#allocation5 + $0x8] sm:$0xff]  ;;  %v49_v15 = vld [vmem:[#allocation5] sm:$0xff]  ;;  %v48_v16 = vld [vmem:[%s298_s0] sm:$0xff]  ;;  %s254_s0 = smov 32  }
  0x11   :  { %v162_v17 = vld [vmem:[%s301_s3] ss:$0 sm:$0xff]  ;;  %s255_s3 = smov [#allocation7]  }
  0x12   :  { %72 = vmatpush.msra.mxu0 %v61_v3  ;;  %v109_v36 = vld [vmem:[#allocation2] sm:$0xff]  ;;  %s141_s30 = sshll.u32 %s255_s3, 4  ;;  %s142_s30 = int_to_ptr.vmem [resolvable:$true] %s141_s30 }
  0x14   :  { %73 = vmatpush.msra.mxu0 %v60_v4 }
  0x16   :  { %74 = vmatpush.msra.mxu0 %v59_v5 }
  0x18   :  { %75 = vmatpush.msra.mxu0 %v58_v6 }
  0x1a   :  { %76 = vmatpush.msra.mxu0 %v57_v7 }
  0x1c   :  { %77 = vmatpush.msra.mxu0 %v56_v8 }
  0x1e   :  { %78 = vmatpush.msra.mxu0 %v55_v9 }
  0x20   :  { %79 = vmatpush.msra.mxu0 %v54_v10 }
  0x22   :  { %80 = vmatpush.msra.mxu0 %v53_v11 }
  0x24   :  { %81 = vmatpush.msra.mxu0 %v52_v12 }
  0x26   :  { %82 = vmatpush.msra.mxu0 %v51_v13 }
  0x28   :  { %83 = vmatpush.msra.mxu0 %v50_v14 }
  0x2a   :  { %84 = vmatpush.msra.mxu0 %v49_v15 }
  0x2b   :  { %85 = vmatmul.f32.vlgmr.msra.gmra.mxu0 %v48_v16 }
  0xa8   :  { %v86_v18 = vpop.f32.mrf.mxu0 }
  0xa9   :  { %v87_v19 = vadd.f32 %v162_v17, %v86_v18 }
  0xab   :  { %163 = vtanh.f32 %v87_v19  ;;  %v154_v21 = vmul.f32 -1.442695, %v87_v19 }
  0xad   :  { %165 = vpow2.f32 %v154_v21 }
  0xb1   :  { %v164_v20 = vpop.eup %163 }
  0xb2   :  { %112 = vrot.lane.b32.xlu0 %v164_v20, %s253_s29 }
  0xb3   :  { %v166_v22 = vpop.eup %165 }
  0xb4   :  { %v92_v23 = vadd.f32 1.0, %v166_v22 }
  0xb6   :  { %167 = vrcp.f32 %v92_v23  ;;  %v104_v29 = vand.u32 2147483648, %v92_v23  ;;  %vm98_vm1 = vweird.f32 %v92_v23  ;;  %v102_v30 = vand.u32 2147483647, %v92_v23 }
  0xb8   :  { %v105_v32 = vor.u32 1.1754944e-38, %v104_v29  ;;  %vm103_vm3 = vcmp.eq.f32.partialorder %v102_v30, 8.507059e+37 }
  0xbc   :  { %v168_v24 = vpop.eup %167 }
  0xbd   :  { %v94_v25 = vmul.f32 %v168_v24, %v92_v23  ;;  %vm99_vm0 = vweird.f32 %v168_v24 }
  0xbe   :  { %vm100_vm2 = vmor %vm98_vm1, %vm99_vm0 }
  0xbf   :  { %v95_v26 = vsub.f32 1.0, %v94_v25 }
  0xc1   :  { %v96_v27 = vmul.f32 %v168_v24, %v95_v26 }
  0xc3   :  { %v97_v28 = vadd.f32 %v168_v24, %v96_v27 }
  0xc5   :  { %v101_v31 = vsel %vm100_vm2, %v168_v24, %v97_v28 }
  0xc6   :  { %v106_v34 = vsel %vm103_vm3, %v105_v32, %v101_v31 }
  0xc7   :  { %v110_v37 = vmul.f32 %v109_v36, %v106_v34 }
 0x124   :  { %v113_v33 = vpop.permute.xlu0 %112 }
 0x125   :  { %v115_v35 = vmul.f32 %v113_v33, %v106_v34 }
 0x127   :  { %117 = vrot.lane.b32.xlu0 %v115_v35, %s254_s0 }
 0x199   :  { %v118_v38 = vpop.permute.xlu0 %117 }
 0x19a   :  { %v120_v39 = vadd.f32 %v118_v38, %v110_v37 }
 0x19c   :  { %169 = vtanh.f32 %v120_v39 }
 0x1a2   :  { %v170_v40 = vpop.eup %169 }
 0x1a3   :  { %123 = vrot.lane.b32.xlu1 %v170_v40, %s253_s29 }
 0x215   :  { %v124_v41 = vpop.permute.xlu1 %123 }
 0x216   :  { %v126_v42 = vmul.f32 %v124_v41, %v106_v34 }
 0x218   :  { %128 = vrot.lane.b32.xlu1 %v126_v42, %s254_s0 }
 0x28a   :  { %v129_v43 = vpop.permute.xlu1 %128 }
 0x28b   :  { %v132_v44 = vsel %vm131_vm4, %v129_v43, %v120_v39 }
 0x28c   :  { %v134_v45 = vsel %vm133_vm5, %v132_v44, 0.0 }
 0x28d   :  { %135 = vst [vmem:[#allocation7] sm:$0xff] %v134_v45 }
 0x28e   :  { %146 = dma.vmem_to_hbm [thread:$0]  %s142_s30, 128, %s144_s7, [#allocation4]  }
 0x28f   :  { %247 = dma.done.wait [#allocation4], 128  }
 0x290   :  { %248 = vsyncadd [#allocation4], 4294967168 }
 0x291   :  { %151 = vsyncpa [#allocation3], 1 }
 0x292   :  { %152 = vsyncpa [#allocation6], 1 }
 0x293   :  { %153 = vsyncpa [#allocation4], 1 }

</bundles_post_ra>
